<compile_context>
chip_gen: v7x
topology: tpu7x:2x2x1
jax: 0.10.0
libtpu: 0.0.40
codegen_flags: <defaults>
</compile_context>

<pallas_src>
import jax
import jax.numpy as jnp
from jax.experimental import pallas as pl
from jax.experimental.pallas import tpu as pltpu

# ---- model hyper-parameters (small, consistent with the module) ------------
N_IMG = 4               # spatial side of each image  -> filters are (N, N)
N_DIV = 4               # h['N'], divisor in CustomConvolutionLayer
NUM_FILTERS = 8         # len(filters)
LATENT = 8              # latent_dim (h['L'])
CONTEXT = 4             # context points per batch element
HIDDEN = 20             # hidden width used by FullyConnectedLayer(..., 20)
OUT_H, OUT_W = 4, 4     # output_shape of the decoder FullyConnectedLayer
BATCH = 2
NN = N_IMG * N_IMG
F = NUM_FILTERS
OUT = OUT_H * OUT_W
SLAB_COLS = 32          # lane width of the packed weight slab (>= widest matrix: 20)


# ---------------------------- parameters ------------------------------------
def init_params(key):
    ks = jax.random.split(key, 10)

    def linear(k, fan_in, fan_out):
        k1, k2 = jax.random.split(k)
        bound = 1.0 / jnp.sqrt(jnp.float32(fan_in))
        w = jax.random.uniform(k1, (fan_out, fan_in), jnp.float32, -bound, bound)
        b = jax.random.uniform(k2, (fan_out,), jnp.float32, -bound, bound)
        return w, b

    p = {}
    # synthetic stand-in for generate_filter_combinations(K, L, sigma, N)
    p['filters'] = jax.random.normal(ks[0], (F, N_IMG, N_IMG), jnp.float32)
    p['f1w1'], p['f1b1'] = linear(ks[1], F, HIDDEN)            # fc1.fc1
    p['f1w2'], p['f1b2'] = linear(ks[2], HIDDEN, F)            # fc1.fc  (1*F)
    p['lxy_wmu'], p['lxy_bmu'] = linear(ks[3], 2 * F, LATENT)  # latent_xy.mu
    p['lxy_wvar'], p['lxy_bvar'] = linear(ks[4], 2 * F, LATENT)
    p['lx_wmu'], p['lx_bmu'] = linear(ks[5], F, LATENT)        # latent_x.mu
    p['lx_wvar'], p['lx_bvar'] = linear(ks[6], F, LATENT)
    p['dw1'], p['db1'] = linear(ks[7], 2 * LATENT, HIDDEN)     # fc.fc1
    p['dw2'], p['db2'] = linear(ks[8], HIDDEN, OUT)            # fc.fc
    return p


# ---------------------------- wrapper + kernel --------------------------------
def latent_cnp_forward(params, x_context, y_context, x_target, eps_xy, eps_x):
    f32 = jnp.float32
    B = x_context.shape[0]
    C = CONTEXT
    L = LATENT
    BC = B * C
    two_bc = 2 * BC

    # ---- data slab: [x-context rows | y-context rows | target rows] ----------
    xc = x_context.reshape(BC, NN).astype(f32)
    yc = y_context.reshape(BC, NN).astype(f32)
    xt = x_target.reshape(B, NN).astype(f32)
    data = jnp.concatenate([xc, yc, xt], axis=0)                     # (2BC+B, NN)
    eps_all = jnp.concatenate(
        [eps_xy.reshape(BC, L).astype(f32), eps_x.reshape(B, L).astype(f32)],
        axis=0)                                                      # (BC+B, L)

    # ---- fused / transposed weights ------------------------------------------
    p = params
    filt_t = p['filters'].reshape(F, NN).T                           # (NN, F)
    f1w1_t = p['f1w1'].T                                             # (F, H)
    f1w2_t = p['f1w2'].T                                             # (H, F)
    lxy_wmu_t = p['lxy_wmu'].T                                       # (2F, L)
    lxy_wvar_t = p['lxy_wvar'].T
    lxyA = jnp.concatenate([lxy_wmu_t[:F], lxy_wvar_t[:F]], axis=1)  # (F, 2L)
    lxyB = jnp.concatenate([lxy_wmu_t[F:], lxy_wvar_t[F:]], axis=1)  # (F, 2L)
    lxyb = jnp.concatenate([p['lxy_bmu'], p['lxy_bvar']]).reshape(1, 2 * L)
    lxW = jnp.concatenate([p['lx_wmu'].T, p['lx_wvar'].T], axis=1)   # (F, 2L)
    lxb = jnp.concatenate([p['lx_bmu'], p['lx_bvar']]).reshape(1, 2 * L)
    dw1_t = p['dw1'].T                                               # (2L, H)
    dw2_t = p['dw2'].T                                               # (H, OUT)
    # per-batch context mean and "last context point" selection as matmuls
    avg_mat = jnp.kron(jnp.eye(B, dtype=f32), jnp.full((1, C), 1.0 / C, f32))  # (B, BC)
    sel_row = jnp.zeros((1, C), f32).at[0, C - 1].set(1.0)
    sel_mat = jnp.kron(jnp.eye(B, dtype=f32), sel_row)                         # (B, BC)

    mats = [
        ('filt', filt_t),
        ('f1w1', f1w1_t), ('f1b1', p['f1b1'].reshape(1, HIDDEN)),
        ('f1w2', f1w2_t), ('f1b2', p['f1b2'].reshape(1, F)),
        ('lxyA', lxyA), ('lxyB', lxyB), ('lxyb', lxyb),
        ('lxW', lxW), ('lxb', lxb),
        ('dw1', dw1_t), ('db1', p['db1'].reshape(1, HIDDEN)),
        ('dw2', dw2_t), ('db2', p['db2'].reshape(1, OUT)),
        ('avg', avg_mat), ('sel', sel_mat),
    ]

    # ---- pack everything into one (rows, 32) slab, 8-sublane aligned blocks --
    offs = {}
    row = 0
    for name, m in mats:
        offs[name] = row
        row += (-(-m.shape[0] // 8)) * 8
    slab_rows = row
    wslab = jnp.zeros((slab_rows, SLAB_COLS), f32)
    for name, m in mats:
        r0 = offs[name]
        wslab = wslab.at[r0:r0 + m.shape[0], :m.shape[1]].set(m.astype(f32))

    out_cols = 2 * L + 2 * L + OUT   # [mu_xy|logvar_xy | mu_x|logvar_x | logits]
    inv_n = 1.0 / float(N_DIV)

    # ---------------------------- Pallas kernel -------------------------------
    def kernel(data_ref, eps_ref, w_ref, out_ref):
        def w(name, r, c):
            o = offs[name]
            return w_ref[o:o + r, 0:c]

        x = data_ref[...]                                   # (2BC+B, NN)
        eps = eps_ref[...]                                  # (BC+B, L)

        # CustomConvolutionLayer for x-context, y-context and target in ONE dot
        conv = jnp.dot(x, w('filt', NN, F),
                       preferred_element_type=jnp.float32) * inv_n   # (2BC+B, F)

        # fc1 (FullyConnectedLayer F -> (1, F)) on both context paths at once
        ctx = conv[:two_bc]                                 # (2BC, F)
        h1 = jnp.maximum(
            jnp.dot(ctx, w('f1w1', F, HIDDEN), preferred_element_type=jnp.float32)
            + w('f1b1', 1, HIDDEN), 0.0)                    # (2BC, H)
        o1 = (jnp.dot(h1, w('f1w2', HIDDEN, F), preferred_element_type=jnp.float32)
              + w('f1b2', 1, F))                            # (2BC, F)
        ox = o1[:BC]                                        # (BC, F)
        oy = o1[BC:]                                        # (BC, F)

        # latent_xy: mu|logvar fused into one (F, 2L) weight per half
        ml_xy = (jnp.dot(ox, w('lxyA', F, 2 * L), preferred_element_type=jnp.float32)
                 + jnp.dot(oy, w('lxyB', F, 2 * L), preferred_element_type=jnp.float32)
                 + w('lxyb', 1, 2 * L))                     # (BC, 2L)
        mu_xy = ml_xy[:, :L]
        logvar_xy = ml_xy[:, L:2 * L]
        z = mu_xy + eps[:BC] * jnp.exp(0.5 * logvar_xy)     # (BC, L)

        # per-batch mean over context + last-context-point selection (on MXU)
        z_avg = jnp.dot(w('avg', B, BC), z, preferred_element_type=jnp.float32)        # (B, L)
        ml_xy_last = jnp.dot(w('sel', B, BC), ml_xy, preferred_element_type=jnp.float32)  # (B, 2L)

        # target path: conv -> latent_x (mu|logvar fused) -> reparameterize
        conv_t = conv[two_bc:]                              # (B, F)
        ml_x = (jnp.dot(conv_t, w('lxW', F, 2 * L), preferred_element_type=jnp.float32)
                + w('lxb', 1, 2 * L))                       # (B, 2L)
        mu_x = ml_x[:, :L]
        logvar_x = ml_x[:, L:2 * L]
        z_x = mu_x + eps[BC:] * jnp.exp(0.5 * logvar_x)     # (B, L)

        # decoder FullyConnectedLayer (2L -> (4,4)): single dot on cat([z_avg, z_x])
        z_comb = jnp.concatenate([z_avg, z_x], axis=-1)     # (B, 2L)
        hd = jnp.maximum(
            jnp.dot(z_comb, w('dw1', 2 * L, HIDDEN), preferred_element_type=jnp.float32)
            + w('db1', 1, HIDDEN), 0.0)                     # (B, H)
        logits = (jnp.dot(hd, w('dw2', HIDDEN, OUT), preferred_element_type=jnp.float32)
                  + w('db2', 1, OUT))                       # (B, OUT)

        # one lane-packed store: [mu_xy|logvar_xy | mu_x|logvar_x | logits]
        out_ref[...] = jnp.concatenate([ml_xy_last, ml_x, logits], axis=-1)

    out_packed = pl.pallas_call(
        kernel,
        out_shape=jax.ShapeDtypeStruct((B, out_cols), f32),
        in_specs=[
            pl.BlockSpec(memory_space=pltpu.MemorySpace.VMEM),
            pl.BlockSpec(memory_space=pltpu.MemorySpace.VMEM),
            pl.BlockSpec(memory_space=pltpu.MemorySpace.VMEM),
        ],
        out_specs=pl.BlockSpec(memory_space=pltpu.MemorySpace.VMEM),
    )(data, eps_all, wslab)

    # ---- unpack (free XLA plumbing): reshape/view + row-wise softmax ----------
    ml_xy_last = out_packed[:, 0:2 * L]
    ml_x = out_packed[:, 2 * L:4 * L]
    logits = out_packed[:, 4 * L:4 * L + OUT]
    mu_xy, logvar_xy = ml_xy_last[:, :L], ml_xy_last[:, L:]
    mu_x, logvar_x = ml_x[:, :L], ml_x[:, L:]
    # view(-1, *output_shape) + softmax moved out of the kernel (avoids 1x16->4x4
    # in-kernel relayout per the perf review); numerics are identical.
    out_img = jax.nn.softmax(logits.reshape(B, 1, OUT_H, OUT_W), axis=-1)
    return out_img, mu_xy, logvar_xy, mu_x, logvar_x


# ------------------------- pure-JAX reference --------------------------------
def reference_forward(p, x_context, y_context, x_target, eps_xy, eps_x):
    B = x_context.shape[0]
    filt = p['filters'].reshape(F, NN)

    def conv(v):
        return (v @ filt.T) / N_DIV

    def fc1(v):
        h = jnp.maximum(v @ p['f1w1'].T + p['f1b1'], 0.0)
        return h @ p['f1w2'].T + p['f1b2']

    xc = x_context.reshape(B, CONTEXT, NN)
    yc = y_context.reshape(B, CONTEXT, NN)
    ox = fc1(conv(xc))
    oy = fc1(conv(yc))
    cat = jnp.concatenate([ox, oy], axis=-1)                   # (B, C, 2F)
    mu = cat @ p['lxy_wmu'].T + p['lxy_bmu']
    logvar = cat @ p['lxy_wvar'].T + p['lxy_bvar']
    z = mu + eps_xy * jnp.exp(0.5 * logvar)
    z_avg = z.mean(axis=1)                                     # (B, L)

    ct = conv(x_target.reshape(B, NN))
    mu_t = ct @ p['lx_wmu'].T + p['lx_bmu']
    logvar_t = ct @ p['lx_wvar'].T + p['lx_bvar']
    z_x = mu_t + eps_x * jnp.exp(0.5 * logvar_t)

    z_comb = jnp.concatenate([z_avg, z_x], axis=-1)            # (B, 2L)
    h = jnp.maximum(z_comb @ p['dw1'].T + p['db1'], 0.0)
    logits = (h @ p['dw2'].T + p['db2']).reshape(B, 1, OUT_H, OUT_W)
    out = jax.nn.softmax(logits, axis=-1)
    return out, mu[:, -1, :], logvar[:, -1, :], mu_t, logvar_t


# ------------------------------- main -----------------------------------------
if __name__ == "__main__":
    key = jax.random.PRNGKey(0)
    kp, kx, ky, kt, ke1, ke2 = jax.random.split(key, 6)

    params = init_params(kp)
    x_context = jax.random.normal(kx, (BATCH, CONTEXT, N_IMG, N_IMG), jnp.float32)
    y_context = jax.random.normal(ky, (BATCH, CONTEXT, N_IMG, N_IMG), jnp.float32)
    x_target = jax.random.normal(kt, (BATCH, N_IMG, N_IMG), jnp.float32)
    # deterministic reparameterization noise (stand-in for torch.randn_like)
    eps_xy = jax.random.normal(ke1, (BATCH, CONTEXT, LATENT), jnp.float32)
    eps_x = jax.random.normal(ke2, (BATCH, LATENT), jnp.float32)

    outs = latent_cnp_forward(params, x_context, y_context, x_target, eps_xy, eps_x)
    outs = jax.block_until_ready(outs)

    refs = reference_forward(params, x_context, y_context, x_target, eps_xy, eps_x)
    for got, ref in zip(outs, refs):
        assert got.shape == ref.shape, (got.shape, ref.shape)
        assert jnp.allclose(got, ref, rtol=1e-2, atol=1e-3), float(jnp.max(jnp.abs(got - ref)))

    print("KERNEL_OK")
</pallas_src>

<mosaic_0001>
module attributes {stable_mosaic.version = 11 : i64} {
  func.func @kernel(%arg0: memref<18x16xf32, #tpu.memory_space<vmem>>, %arg1: memref<10x8xf32, #tpu.memory_space<vmem>>, %arg2: memref<176x32xf32, #tpu.memory_space<vmem>>, %arg3: memref<2x48xf32, #tpu.memory_space<vmem>>) attributes {dimension_semantics = [], scalar_prefetch = 0 : i64, scratch_operands = 0 : i64, tpu.core_type = #tpu.core_type<tc>} {
    %c0 = arith.constant 0 : index
    %c0_0 = arith.constant 0 : index
    %0 = vector.load %arg0[%c0, %c0_0] : memref<18x16xf32, #tpu.memory_space<vmem>>, vector<18x16xf32>
    %c0_1 = arith.constant 0 : index
    %c0_2 = arith.constant 0 : index
    %1 = vector.load %arg1[%c0_1, %c0_2] : memref<10x8xf32, #tpu.memory_space<vmem>>, vector<10x8xf32>
    %c0_3 = arith.constant 0 : index
    %c0_4 = arith.constant 0 : index
    %2 = vector.load %arg2[%c0_3, %c0_4] : memref<176x32xf32, #tpu.memory_space<vmem>>, vector<16x8xf32>
    %cst = arith.constant dense<0.000000e+00> : vector<18x8xf32>
    %3 = tpu.matmul %0, %2, %cst {dimension_numbers = #tpu.dot_dimension_numbers<[1], [0], [0], [1], [0, 0, 1, 1], [], []>} : vector<18x16xf32>, vector<16x8xf32>, vector<18x8xf32> -> vector<18x8xf32>
    %cst_5 = arith.constant 2.500000e-01 : f32
    %4 = vector.broadcast %cst_5 : f32 to vector<18x8xf32>
    %5 = arith.mulf %3, %4 : vector<18x8xf32>
    %6 = vector.extract_strided_slice %5 {offsets = [0, 0], sizes = [16, 8], strides = [1, 1]} : vector<18x8xf32> to vector<16x8xf32>
    %c16 = arith.constant 16 : index
    %c0_6 = arith.constant 0 : index
    %7 = vector.load %arg2[%c16, %c0_6] : memref<176x32xf32, #tpu.memory_space<vmem>>, vector<8x20xf32>
    %cst_7 = arith.constant dense<0.000000e+00> : vector<16x20xf32>
    %8 = tpu.matmul %6, %7, %cst_7 {dimension_numbers = #tpu.dot_dimension_numbers<[1], [0], [0], [1], [0, 0, 1, 1], [], []>} : vector<16x8xf32>, vector<8x20xf32>, vector<16x20xf32> -> vector<16x20xf32>
    %c24 = arith.constant 24 : index
    %c0_8 = arith.constant 0 : index
    %9 = vector.load %arg2[%c24, %c0_8] : memref<176x32xf32, #tpu.memory_space<vmem>>, vector<1x20xf32>
    %10 = vector.broadcast %9 : vector<1x20xf32> to vector<16x20xf32>
    %11 = arith.addf %8, %10 : vector<16x20xf32>
    %cst_9 = arith.constant 0.000000e+00 : f32
    %12 = vector.broadcast %cst_9 : f32 to vector<16x20xf32>
    %13 = arith.maximumf %11, %12 : vector<16x20xf32>
    %c32 = arith.constant 32 : index
    %c0_10 = arith.constant 0 : index
    %14 = vector.load %arg2[%c32, %c0_10] : memref<176x32xf32, #tpu.memory_space<vmem>>, vector<20x8xf32>
    %cst_11 = arith.constant dense<0.000000e+00> : vector<16x8xf32>
    %15 = tpu.matmul %13, %14, %cst_11 {dimension_numbers = #tpu.dot_dimension_numbers<[1], [0], [0], [1], [0, 0, 1, 1], [], []>} : vector<16x20xf32>, vector<20x8xf32>, vector<16x8xf32> -> vector<16x8xf32>
    %c56 = arith.constant 56 : index
    %c0_12 = arith.constant 0 : index
    %16 = vector.load %arg2[%c56, %c0_12] : memref<176x32xf32, #tpu.memory_space<vmem>>, vector<1x8xf32>
    %17 = vector.broadcast %16 : vector<1x8xf32> to vector<16x8xf32>
    %18 = arith.addf %15, %17 : vector<16x8xf32>
    %19 = vector.extract_strided_slice %18 {offsets = [0, 0], sizes = [8, 8], strides = [1, 1]} : vector<16x8xf32> to vector<8x8xf32>
    %20 = vector.extract_strided_slice %18 {offsets = [8, 0], sizes = [8, 8], strides = [1, 1]} : vector<16x8xf32> to vector<8x8xf32>
    %c64 = arith.constant 64 : index
    %c0_13 = arith.constant 0 : index
    %21 = vector.load %arg2[%c64, %c0_13] : memref<176x32xf32, #tpu.memory_space<vmem>>, vector<8x16xf32>
    %cst_14 = arith.constant dense<0.000000e+00> : vector<8x16xf32>
    %22 = tpu.matmul %19, %21, %cst_14 {dimension_numbers = #tpu.dot_dimension_numbers<[1], [0], [0], [1], [0, 0, 1, 1], [], []>} : vector<8x8xf32>, vector<8x16xf32>, vector<8x16xf32> -> vector<8x16xf32>
    %c72 = arith.constant 72 : index
    %c0_15 = arith.constant 0 : index
    %23 = vector.load %arg2[%c72, %c0_15] : memref<176x32xf32, #tpu.memory_space<vmem>>, vector<8x16xf32>
    %cst_16 = arith.constant dense<0.000000e+00> : vector<8x16xf32>
    %24 = tpu.matmul %20, %23, %cst_16 {dimension_numbers = #tpu.dot_dimension_numbers<[1], [0], [0], [1], [0, 0, 1, 1], [], []>} : vector<8x8xf32>, vector<8x16xf32>, vector<8x16xf32> -> vector<8x16xf32>
    %25 = arith.addf %22, %24 : vector<8x16xf32>
    %c80 = arith.constant 80 : index
    %c0_17 = arith.constant 0 : index
    %26 = vector.load %arg2[%c80, %c0_17] : memref<176x32xf32, #tpu.memory_space<vmem>>, vector<1x16xf32>
    %27 = vector.broadcast %26 : vector<1x16xf32> to vector<8x16xf32>
    %28 = arith.addf %25, %27 : vector<8x16xf32>
    %29 = vector.extract_strided_slice %28 {offsets = [0, 0], sizes = [8, 8], strides = [1, 1]} : vector<8x16xf32> to vector<8x8xf32>
    %30 = vector.extract_strided_slice %28 {offsets = [0, 8], sizes = [8, 8], strides = [1, 1]} : vector<8x16xf32> to vector<8x8xf32>
    %31 = vector.extract_strided_slice %1 {offsets = [0, 0], sizes = [8, 8], strides = [1, 1]} : vector<10x8xf32> to vector<8x8xf32>
    %cst_18 = arith.constant 5.000000e-01 : f32
    %32 = vector.broadcast %cst_18 : f32 to vector<8x8xf32>
    %33 = arith.mulf %32, %30 : vector<8x8xf32>
    %34 = math.exp %33 : vector<8x8xf32>
    %35 = arith.mulf %31, %34 : vector<8x8xf32>
    %36 = arith.addf %29, %35 : vector<8x8xf32>
    %c160 = arith.constant 160 : index
    %c0_19 = arith.constant 0 : index
    %37 = vector.load %arg2[%c160, %c0_19] : memref<176x32xf32, #tpu.memory_space<vmem>>, vector<2x8xf32>
    %cst_20 = arith.constant dense<0.000000e+00> : vector<2x8xf32>
    %38 = tpu.matmul %37, %36, %cst_20 {dimension_numbers = #tpu.dot_dimension_numbers<[1], [0], [0], [1], [0, 0, 1, 1], [], []>} : vector<2x8xf32>, vector<8x8xf32>, vector<2x8xf32> -> vector<2x8xf32>
    %c168 = arith.constant 168 : index
    %c0_21 = arith.constant 0 : index
    %39 = vector.load %arg2[%c168, %c0_21] : memref<176x32xf32, #tpu.memory_space<vmem>>, vector<2x8xf32>
    %cst_22 = arith.constant dense<0.000000e+00> : vector<2x16xf32>
    %40 = tpu.matmul %39, %28, %cst_22 {dimension_numbers = #tpu.dot_dimension_numbers<[1], [0], [0], [1], [0, 0, 1, 1], [], []>} : vector<2x8xf32>, vector<8x16xf32>, vector<2x16xf32> -> vector<2x16xf32>
    %41 = vector.extract_strided_slice %5 {offsets = [16, 0], sizes = [2, 8], strides = [1, 1]} : vector<18x8xf32> to vector<2x8xf32>
    %c88 = arith.constant 88 : index
    %c0_23 = arith.constant 0 : index
    %42 = vector.load %arg2[%c88, %c0_23] : memref<176x32xf32, #tpu.memory_space<vmem>>, vector<8x16xf32>
    %cst_24 = arith.constant dense<0.000000e+00> : vector<2x16xf32>
    %43 = tpu.matmul %41, %42, %cst_24 {dimension_numbers = #tpu.dot_dimension_numbers<[1], [0], [0], [1], [0, 0, 1, 1], [], []>} : vector<2x8xf32>, vector<8x16xf32>, vector<2x16xf32> -> vector<2x16xf32>
    %c96 = arith.constant 96 : index
    %c0_25 = arith.constant 0 : index
    %44 = vector.load %arg2[%c96, %c0_25] : memref<176x32xf32, #tpu.memory_space<vmem>>, vector<1x16xf32>
    %45 = vector.broadcast %44 : vector<1x16xf32> to vector<2x16xf32>
    %46 = arith.addf %43, %45 : vector<2x16xf32>
    %47 = vector.extract_strided_slice %46 {offsets = [0, 0], sizes = [2, 8], strides = [1, 1]} : vector<2x16xf32> to vector<2x8xf32>
    %48 = vector.extract_strided_slice %46 {offsets = [0, 8], sizes = [2, 8], strides = [1, 1]} : vector<2x16xf32> to vector<2x8xf32>
    %49 = vector.extract_strided_slice %1 {offsets = [8, 0], sizes = [2, 8], strides = [1, 1]} : vector<10x8xf32> to vector<2x8xf32>
    %cst_26 = arith.constant 5.000000e-01 : f32
    %50 = vector.broadcast %cst_26 : f32 to vector<2x8xf32>
    %51 = arith.mulf %50, %48 : vector<2x8xf32>
    %52 = math.exp %51 : vector<2x8xf32>
    %53 = arith.mulf %49, %52 : vector<2x8xf32>
    %54 = arith.addf %47, %53 : vector<2x8xf32>
    %55 = tpu.concatenate %38, %54 in 1 : vector<2x8xf32>, vector<2x8xf32> -> vector<2x16xf32>
    %c104 = arith.constant 104 : index
    %c0_27 = arith.constant 0 : index
    %56 = vector.load %arg2[%c104, %c0_27] : memref<176x32xf32, #tpu.memory_space<vmem>>, vector<16x20xf32>
    %cst_28 = arith.constant dense<0.000000e+00> : vector<2x20xf32>
    %57 = tpu.matmul %55, %56, %cst_28 {dimension_numbers = #tpu.dot_dimension_numbers<[1], [0], [0], [1], [0, 0, 1, 1], [], []>} : vector<2x16xf32>, vector<16x20xf32>, vector<2x20xf32> -> vector<2x20xf32>
    %c120 = arith.constant 120 : index
    %c0_29 = arith.constant 0 : index
    %58 = vector.load %arg2[%c120, %c0_29] : memref<176x32xf32, #tpu.memory_space<vmem>>, vector<1x20xf32>
    %59 = vector.broadcast %58 : vector<1x20xf32> to vector<2x20xf32>
    %60 = arith.addf %57, %59 : vector<2x20xf32>
    %cst_30 = arith.constant 0.000000e+00 : f32
    %61 = vector.broadcast %cst_30 : f32 to vector<2x20xf32>
    %62 = arith.maximumf %60, %61 : vector<2x20xf32>
    %c128 = arith.constant 128 : index
    %c0_31 = arith.constant 0 : index
    %63 = vector.load %arg2[%c128, %c0_31] : memref<176x32xf32, #tpu.memory_space<vmem>>, vector<20x16xf32>
    %cst_32 = arith.constant dense<0.000000e+00> : vector<2x16xf32>
    %64 = tpu.matmul %62, %63, %cst_32 {dimension_numbers = #tpu.dot_dimension_numbers<[1], [0], [0], [1], [0, 0, 1, 1], [], []>} : vector<2x20xf32>, vector<20x16xf32>, vector<2x16xf32> -> vector<2x16xf32>
    %c152 = arith.constant 152 : index
    %c0_33 = arith.constant 0 : index
    %65 = vector.load %arg2[%c152, %c0_33] : memref<176x32xf32, #tpu.memory_space<vmem>>, vector<1x16xf32>
    %66 = vector.broadcast %65 : vector<1x16xf32> to vector<2x16xf32>
    %67 = arith.addf %64, %66 : vector<2x16xf32>
    %68 = tpu.concatenate %40, %46, %67 in 1 : vector<2x16xf32>, vector<2x16xf32>, vector<2x16xf32> -> vector<2x48xf32>
    %c0_34 = arith.constant 0 : index
    %c0_35 = arith.constant 0 : index
    %69 = vector.load %arg3[%c0_34, %c0_35] : memref<2x48xf32, #tpu.memory_space<vmem>>, vector<2x48xf32>
    tpu.vector_store %arg3[%c0_34, %c0_35], %68 {strides = array<i32>} : memref<2x48xf32, #tpu.memory_space<vmem>>, vector<2x48xf32>,
    return
  }
}

</mosaic_0001>

<bundles_post_ra>
// kernel: tpu_custom_call.1
= control target key start
LH: loop header
LB: loop body
LE: loop exit
PB: predicated region body
PF: predicated region fallthrough
CT: control target
= control target key end

     0   :  { %v1064_v2 = vmov 0.0|0.0   ;;  %vm1065_vm0 = vmmov 0   ;;  %v1066_v4 = vmov 0.0   ;;  %s1235_s0 = inlined_call_operand.vmem [shape: f32[18,16], index: 0, kind: input, shape index: {}]   ;;  %s1236_s1 = inlined_call_operand.vmem [shape: f32[10,8], index: 1, kind: input, shape index: {}]   ;;  %s1237_s2 = inlined_call_operand.vmem [shape: f32[176,32], index: 2, kind: input, shape index: {}]   ;;  %s1238_s3 = inlined_call_operand.hbm [shape: f32[2,48], index: 3, kind: output, shape index: {}]  }
   0x1   :  { %v20_v0 = vld [vmem:[%s1237_s2] sm:$0xff]  ;;  %v21_v1 = vld [vmem:[%s1237_s2 + $0x8] sm:$0xff]  ;;  %1015 = vmatprep.subr.bf16.mxu0 %v1064_v2  ;;  %951 = vmatprep.mubr.msk.f32.mxu0 %vm1065_vm0, %v1066_v4 }
   0x2   :  { %v1016_v3 = vpack.c.bf16 %v21_v1, %v20_v0 }
   0x3   :  { %8 = vsyncpa [#allocation3], 0  ;;  %v15_v5 = vld [vmem:[%s1235_s0] sm:$0xff]  ;;  %vm22_vm1 = vcmask 130048   ;;  %v16_v6 = vld [vmem:[%s1235_s0 + $0x8] sm:$0xff]  ;;  %vm121_vm2 = vcmask 64512  }
   0x4   :  { %1017 = vmatpush3.bf16.msra.mxu0 %v1016_v3  ;;  %v115_v7 = vld [vmem:[%s1237_s2 + $0x10] sm:$0xff]  ;;  %v205_v14 = vld [vmem:[%s1237_s2 + $0x20] sm:$0xff]  ;;  %v206_v15 = vld [vmem:[%s1237_s2 + $0x28] sm:$0xff]  ;;  %vm220_vm3 = vcmask 1043456   ;;  %vm213_vm4 = vcmask 162816   ;;  %s1067_s12 = smov 120  }
   0x5   :  { %979 = vmatprep.subr.mxu0 %v1066_v4  ;;  %960 = vmatprep.subr.mxu1 %v115_v7  ;;  %v1018_v16 = vpack.c.bf16 %v206_v15, %v205_v14  ;;  %v207_v17 = vld [vmem:[%s1237_s2 + $0x30] sm:$0xf]  ;;  %v299_v18 = vld [vmem:[%s1237_s2 + $0x40] sm:$0xff]  ;;  %v898_v20 = vld [vmem:[%s1237_s2 + $0x18] ss:$0 sm:$0xff]  ;;  %s1068_s29 = smov 8  }
   0x6   :  { %961 = vmatpush3.msra.mxu1 %v115_v7  ;;  %v17_v19 = vld [vmem:[%s1235_s0 + $0x10] sm:$0x3]  ;;  %v300_v27 = vld [vmem:[%s1237_s2 + $0x48] sm:$0xff]  ;;  %v901_v30 = vld [vmem:[%s1237_s2 + $0x38] ss:$0 sm:$0xff]  ;;  %s1069_s30 = smov 16  }
   0x7   :  { %952 = vmatmul.mubr.msk.f32.vlgmr.msra.gmra.mrb[0].mxu0 %vm22_vm1, %v15_v5  ;;  %1019 = vmatprep.subr.bf16.mxu1 %v1018_v16  ;;  %v907_v38 = vld [vmem:[%s1237_s2 + $0x50] ss:$0 sm:$0xff]  ;;  %v18_v45 = vld [vmem:[%s1236_s1] sm:$0xff]  ;;  %v610_v50 = vld [vmem:[%s1237_s2 + $0x58] sm:$0xff]  ;;  %s1071_s13 = smov [#allocation2]   ;;  %vm877_vm5 = vcmask 261120  }
   0x8   :  { %954 = vmatprep.mubr.msk.f32.mxu0 %vm1065_vm0, %v1066_v4  ;;  %980 = vmatpush3.msra.mxu0 %v299_v18  ;;  %v462_v49 = vld [vmem:[%s1237_s2 + $0xa0] sm:$0x3]  ;;  %v536_v52 = vld [vmem:[%s1237_s2 + $0xa8] sm:$0x3]  ;;  %v704_v62 = vld [vmem:[%s1237_s2 + $0x70] sm:$0xff]  ;;  %s887_s14 = sshll.u32 %s1071_s13, 4  ;;  %s888_s14 = int_to_ptr.vmem [resolvable:$true] %s887_s14 }
   0x9   :  { %989 = vmatprep.subr.mxu0 %v1066_v4  ;;  %v910_v55 = vld [vmem:[%s1237_s2 + $0x60] ss:$0 sm:$0xff]  ;;  %v703_v61 = vld [vmem:[%s1237_s2 + $0x68] sm:$0xff]  ;;  %v912_v14 = vld [vmem:[%s1237_s2 + $0x78] ss:$0 sm:$0xff]  ;;  %vm879_vm6 = vcmask 386048   ;;  %p1045_p1 = scmp.lt.s32.totalorder %s888_s14, %s888_s14 }
   0xa   :  { %v1023_v63 = vpack.c.bf16 %v704_v62, %v703_v61  ;;  %v19_v3 = vld [vmem:[%s1236_s1 + $0x8] sm:$0x3]  ;;  %s1040_s15 = scalar_lea.vmem %s888_s14, 32 }
   0xb   :  { %955 = vmatmul.mubr.msk.f32.gmra.mrb[2].mxu0 %vm22_vm1, %v16_v6  ;;  %p1041_p0 = scmp.ne.s32.totalorder %s888_s14, %s1040_s15  ;;  %p1046_p2 = scmp.lt.s32.totalorder %s1040_s15, %s1040_s15 }
   0xc   :  { %957 = vmatprep.mubr.msk.f32.mxu0 %vm1065_vm0, %v1066_v4 }
   0xd   :  { %p1047_p3 = por %p1046_p2, %p1045_p1 }
   0xf   :  { %958 = vmatmul.mubr.msk.f32.gmra.mrb[4].mxu0 %vm22_vm1, %v17_v19  ;;  %p1048_p4 = pnand %p1047_p3, %p1041_p0 }
  0x10   :  { %981 = vmatprep.mubr.msk.f32.mxu0 %vm1065_vm0, %v1066_v4 }
  0xda   :  { %v98_v8 = vpop.f32.mrb[0].mxu0 }
  0xdb   :  { %v112_v9 = vmul.f32 0.25, %v98_v8  ;;  %v953_v10 = vpop.f32.mrb[1].mxu0 }
  0xdc   :  { %v784_v10 = vld [vmem:[%s1237_s2 + $0x80] sm:$0xff] }
  0xdd   :  { %962 = vmatprep.mubr.msk.f32.mxu1 %vm121_vm2, %v112_v9 }
  0xde   :  { %v103_v11 = vpop.f32.mrb[2].mxu0 }
  0xdf   :  { %v113_v12 = vmul.f32 0.25, %v103_v11  ;;  %v956_v13 = vpop.f32.mrb[3].mxu0  ;;  %v785_v11 = vld [vmem:[%s1237_s2 + $0x88] sm:$0xff] }
  0xe0   :  { %v786_v13 = vld [vmem:[%s1237_s2 + $0x90] sm:$0xf] }
  0xe1   :  { %963 = vmatmul.mubr.msk.f32.vlgmr.msra.gmra.mrb[0].mxu1 %vm121_vm2, %v113_v12  ;;  %v1026_v12 = vpack.c.bf16 %v785_v11, %v784_v10 }
  0xe2   :  { %1021 = vmatpush3.bf16.msra.mxu1 %v1018_v16  ;;  %v108_v28 = vpop.f32.mrb[4].mxu0 }
  0xe3   :  { %969 = vmatprep.subr.msk.mxu1 %vm220_vm3, %v207_v17  ;;  %v959_v29 = vpop.f32.mrb[5].mxu0  ;;  %v114_v51 = vmul.f32 0.25, %v108_v28 }
  0xe6   :  { %970 = vmatpush3.msk.msra.mxu1 %vm220_vm3, %v207_v17 }
  0xe7   :  { %974 = vmatprep.subr.mxu1 %v1066_v4 }
 0x1b4   :  { %v964_v21 = vpop.f32.mrb[0].mxu1 }
 0x1b5   :  { %v200_v22 = vadd.f32 %v964_v21, %v898_v20  ;;  %v194_v23 = vpop.f32.mrb[1].mxu1 }
 0x1b6   :  { %v195_v24 = vadd.f32 %v898_v20, %v194_v23 }
 0x1b7   :  { %v204_v26 = vmax.f32 %v200_v22, 0.0 }
 0x1b8   :  { %v203_v25 = vmax.f32 %v195_v24, 0.0 }
 0x1ba   :  { %971 = vmatprep.mubr.msk.f32.mxu1 %vm213_vm4, %v203_v25 }
 0x1bb   :  { %972 = vmatmul.mubr.msk.f32.vlgmr.msra.gmra.mrb[2].mxu1 %vm213_vm4, %v204_v26 }
 0x1bc   :  { %976 = vmatprep.mubr.msk.f32.mxu1 %vm1065_vm0, %v1066_v4  ;;  %975 = vmatpush3.msra.mxu1 %v300_v27 }
 0x1bd   :  { %984 = vmatprep.subr.mxu1 %v1066_v4 }
 0x28e   :  { %v973_v31 = vpop.f32.mrb[2].mxu1 }
 0x28f   :  { %v296_v32 = vadd.f32 %v973_v31, %v901_v30  ;;  %v290_v33 = vpop.f32.mrb[3].mxu1 }
 0x290   :  { %v291_v34 = vadd.f32 %v901_v30, %v290_v33 }
 0x291   :  { %977 = vmatmul.mubr.msk.f32.vlgmr.msra.gmra.mrb[4].mxu1 %vm121_vm2, %v296_v32 }
 0x292   :  { %982 = vmatmul.mubr.msk.f32.vlgmr.msra.gmra.mrb[6].mxu0 %vm121_vm2, %v291_v34  ;;  %986 = vmatprep.mubr.msk.f32.mxu1 %vm1065_vm0, %v1066_v4 }
 0x293   :  { %991 = vmatprep.mubr.msk.f32.mxu0 %vm1065_vm0, %v1066_v4 }
 0x364   :  { %v370_v35 = vpop.f32.mrb[4].mxu1 }
 0x365   :  { %v978_v36 = vpop.f32.mrb[5].mxu1  ;;  %v443_v37 = vpop.f32.mrb[6].mxu0 }
 0x366   :  { %v444_v39 = vadd.f32 %v443_v37, %v370_v35  ;;  %v983_v40 = vpop.f32.mrb[7].mxu0 }
 0x368   :  { %v452_v41 = vadd.f32 %v907_v38, %v444_v39 }
 0x36a   :  { %v453_v42 = vmul.f32 0.5, %v452_v41  ;;  %990 = vmatpush3.msra.mxu0 %v452_v41 }
 0x36b   :  { %1022 = vmatprep.subr.bf16.mxu0 %v1064_v2  ;;  %992 = vmatmul.mubr.msk.f32.vlgmr.msra.gmra.mrb[8].mxu0 %vm121_vm2, %v536_v52 }
 0x36c   :  { %v454_v43 = vmul.f32 1.442695, %v453_v42  ;;  %1003 = vmatprep.mubr.msk.f32.mxu0 %vm1065_vm0, %v1066_v4  ;;  %1024 = vmatpush3.bf16.msra.mxu0 %v1023_v63 }
 0x36e   :  { %1036 = vpow2.f32 %v454_v43 }
 0x378   :  { %v1037_v44 = vpop.eup %1036 }
 0x379   :  { %457 = vrot.lane.b32.xlu0 %v1037_v44, %s1067_s12 }
 0x3eb   :  { %v458_v46 = vpop.permute.xlu0 %457 }
 0x3ec   :  { %v460_v47 = vmul.f32 %v458_v46, %v18_v45 }
 0x3ee   :  { %v461_v48 = vadd.f32 %v460_v47, %v452_v41 }
 0x3f0   :  { %985 = vmatpush3.msra.mxu1 %v461_v48 }
 0x3f1   :  { %987 = vmatmul.mubr.msk.f32.vlgmr.msra.gmra.mrb[6].mxu1 %vm121_vm2, %v462_v49  ;;  %994 = vmatprep.subr.mxu1 %v1066_v4 }
 0x3f2   :  { %995 = vmatpush3.msra.mxu1 %v610_v50  ;;  %996 = vmatprep.mubr.msk.f32.mxu1 %vm1065_vm0, %v1066_v4 }
 0x3f3   :  { %1025 = vmatprep.subr.bf16.mxu1 %v1064_v2 }
 0x3f5   :  { %997 = vmatmul.mubr.msk.f32.vlgmr.msra.gmra.mrb[8].mxu1 %vm121_vm2, %v114_v51 }
 0x3f6   :  { %1012 = vmatprep.mubr.msk.f32.mxu1 %vm1065_vm0, %v1066_v4  ;;  %1027 = vmatpush3.bf16.msra.mxu1 %v1026_v12 }
 0x3f7   :  { %1010 = vmatprep.subr.mxu1 %v1066_v4  ;;  %v914_v4 = vld [vmem:[%s1237_s2 + $0x98] ss:$0 sm:$0xff] }
 0x3fa   :  { %1011 = vmatpush3.msk.msra.mxu1 %vm220_vm3, %v786_v13 }
 0x43e   :  { %v606_v1 = vpop.f32.mrb[8].mxu0 }
 0x43f   :  { %v993_v2 = vpop.f32.mrb[9].mxu0 }
 0x4c4   :  { %v532_v53 = vpop.f32.mrb[6].mxu1 }
 0x4c5   :  { %v988_v54 = vpop.f32.mrb[7].mxu1 }
 0x4c8   :  { %v685_v56 = vpop.f32.mrb[8].mxu1 }
 0x4c9   :  { %v686_v57 = vadd.f32 %v910_v55, %v685_v56  ;;  %v998_v58 = vpop.f32.mrb[9].mxu1 }
 0x4cb   :  { %v689_v59 = vmul.f32 0.5, %v686_v57 }
 0x4cd   :  { %v690_v60 = vmul.f32 1.442695, %v689_v59 }
 0x4cf   :  { %1038 = vpow2.f32 %v690_v60 }
 0x4d9   :  { %v1039_v0 = vpop.eup %1038 }
 0x4da   :  { %693 = vrot.lane.b32.xlu0 %v1039_v0, %s1067_s12  ;;  %s1070_s12 = smov 32  }
 0x54c   :  { %v694_v5 = vpop.permute.xlu0 %693 }
 0x54d   :  { %v696_v6 = vmul.f32 %v694_v5, %v19_v3 }
 0x54f   :  { %v697_v7 = vadd.f32 %v696_v6, %v686_v57 }
 0x551   :  { %699 = vrot.lane.b32.xlu1 %v697_v7, %s1068_s29 }
 0x555   :  { %869 = vrot.lane.b32.xlu1 %v686_v57, %s1069_s30 }
 0x5c3   :  { %v700_v8 = vpop.permute.xlu1 %699 }
 0x5c4   :  { %v702_v9 = vsel %vm121_vm2, %v532_v53, %v700_v8 }
 0x5c5   :  { %1004 = vmatmul.mubr.msk.f32.vlgmr.msra.gmra.mrb[10].mxu0 %vm22_vm1, %v702_v9 }
 0x5c7   :  { %v870_v22 = vpop.permute.xlu1 %869 }
 0x5c8   :  { %v876_v23 = vsel %vm22_vm1, %v606_v1, %v870_v22 }
 0x698   :  { %v779_v15 = vpop.f32.mrb[10].mxu0 }
 0x699   :  { %v780_v16 = vadd.f32 %v912_v14, %v779_v15  ;;  %v1005_v17 = vpop.f32.mrb[11].mxu0 }
 0x69b   :  { %v783_v18 = vmax.f32 %v780_v16, 0.0 }
 0x69d   :  { %1013 = vmatmul.mubr.msk.f32.vlgmr.msra.gmra.mrb[10].mxu1 %vm213_vm4, %v783_v18 }
 0x770   :  { %v864_v19 = vpop.f32.mrb[10].mxu1 }
 0x771   :  { %v865_v20 = vadd.f32 %v914_v4, %v864_v19  ;;  %v1014_v21 = vpop.f32.mrb[11].mxu1 }
 0x773   :  { %873 = vrot.lane.b32.xlu0 %v865_v20, %s1070_s12 }
 0x7e5   :  { %v874_v24 = vpop.permute.xlu0 %873 }
 0x7e6   :  { %v878_v25 = vsel %vm877_vm5, %v876_v23, %v874_v24 }
 0x7e7   :  { %880 = vst.msk [vmem:[#allocation2] sm:$0x3] %vm879_vm6, %v878_v25 }
 0x7e8   :  { %1051 = shalt.err (!%p1048_p4)
}
 0x7e9   :  { %s1052_s17 = scalar_lea.hbm %s1238_s3, 32 }
 0x7ea   :  { %p1053_p5 = scmp.ne.s32.totalorder %s1238_s3, %s1052_s17  ;;  %p1056_p6 = scmp.lt.u32.totalorder %s1052_s17, %s1238_s3 }
 0x7ec   :  { %p1058_p7 = pnand %p1056_p6, %p1053_p5 }
 0x7ee   :  { %1061 = shalt.err (!%p1058_p7)
}
 0x7ef   :  { %890 = dma.vmem_to_hbm [thread:$0]  %s888_s14, 32, %s1238_s3, [#allocation3]  }
 0x7f0   :  { %1062 = dma.done.wait [#allocation3], 32  }
 0x7f1   :  { %1063 = vsyncadd [#allocation3], 4294967264 }
 0x7f2   :  { %894 = vsyncpa [#allocation3], 1 }

</bundles_post_ra>
